<compile_context>
chip_gen: v7x
topology: tpu7x:2x2x1
jax: 0.10.0
libtpu: 0.0.40
codegen_flags: <defaults>
</compile_context>

<pallas_src>
import functools
import math

import jax
import jax.numpy as jnp
from jax.experimental import pallas as pl
from jax.experimental.pallas import tpu as pltpu


MATMUL_DTYPE = jnp.bfloat16          # MXU operand dtype (f32 accumulation)


# ----------------------------- per-generation config ------------------------

@functools.lru_cache(maxsize=None)
def _tpu_config():
    """Tile targets + scoped-VMEM limit chosen from the chip's VMEM capacity."""
    vmem_bytes = 64 * 1024 * 1024
    try:
        info = pltpu.get_tpu_info()
        vmem_bytes = int(getattr(info, "vmem_capacity_bytes", vmem_bytes))
    except Exception:
        pass
    if vmem_bytes >= 100 * 1024 * 1024:
        # v5e / v6e: 128 MiB physical VMEM -> big tiles, generous limit.
        return {"vmem_limit": 96 * 1024 * 1024, "tm": 512, "tn": 512, "tk": 1024}
    # v7x (64 MiB) or unknown: stay conservative.
    return {"vmem_limit": 48 * 1024 * 1024, "tm": 256, "tn": 256, "tk": 512}


# ----------------------------- tiling / padding helpers ---------------------

def _round_up(x, m):
    return ((x + m - 1) // m) * m


def _tile_and_pad(dim, target, align):
    """Pick an aligned tile <= target, and the padded dim it divides."""
    t = min(_round_up(dim, align), _round_up(target, align))
    return t, _round_up(dim, t)


def _pick_tile(dim, target, align):
    """Largest multiple of `align` <= target that divides dim, else full dim."""
    if dim <= target or dim % align != 0:
        return dim
    best = align
    t = align
    while t <= target:
        if dim % t == 0:
            best = t
        t += align
    return best


def _pad2d(a, rows, cols):
    pr, pc = rows - a.shape[0], cols - a.shape[1]
    if pr == 0 and pc == 0:
        return a
    return jnp.pad(a, ((0, pr), (0, pc)))


# ----------------------------- Pallas kernels ------------------------------

def _linear_kernel(x_ref, w_ref, *refs, relu, has_bias):
    # grid = (M//tm, N//tn, K//tk); accumulate directly into the f32 output block.
    if has_bias:
        b_ref, o_ref = refs
    else:
        b_ref = None
        (o_ref,) = refs

    k = pl.program_id(2)

    @pl.when(k == 0)
    def _():
        o_ref[...] = jnp.zeros_like(o_ref)

    o_ref[...] += jnp.dot(
        x_ref[...].astype(MATMUL_DTYPE),
        w_ref[...].astype(MATMUL_DTYPE),       # no-op: weights already bf16 in HBM
        preferred_element_type=jnp.float32,
    )

    @pl.when(k == pl.num_programs(2) - 1)
    def _():
        out = o_ref[...]
        if has_bias:
            out = out + b_ref[...]             # bias only on last K step
        if relu:
            out = jnp.maximum(out, 0.0)
        o_ref[...] = out


def _linear_ln_kernel(x_ref, w_ref, b_ref, res_ref, g_ref, beta_ref, o_ref, *, eps):
    # Fused:  out = LayerNorm(residual + (x @ w + b)).
    # grid = (M//tm, K//tk); N (= d_model) stays whole so LN sees the full row.
    k = pl.program_id(1)

    @pl.when(k == 0)
    def _():
        o_ref[...] = jnp.zeros_like(o_ref)

    o_ref[...] += jnp.dot(
        x_ref[...].astype(MATMUL_DTYPE),
        w_ref[...].astype(MATMUL_DTYPE),
        preferred_element_type=jnp.float32,
    )

    @pl.when(k == pl.num_programs(1) - 1)
    def _():
        h = o_ref[...] + b_ref[...] + res_ref[...].astype(jnp.float32)
        mean = jnp.mean(h, axis=-1, keepdims=True)
        var = jnp.mean(jnp.square(h - mean), axis=-1, keepdims=True)
        nh = (h - mean) * jax.lax.rsqrt(var + eps)
        o_ref[...] = nh * g_ref[...] + beta_ref[...]


def _flash_attn_kernel(q_ref, k_ref, v_ref, o_ref, m_ref, l_ref, acc_ref, *, scale):
    # grid = (B, H, num_kv_blocks); online softmax over the kv axis.
    # q_ref: (1,1,S,dk)  k_ref/v_ref: (1,1,tkv,dk)  o_ref: per-(b,h) output block.
    kv = pl.program_id(2)

    @pl.when(kv == 0)
    def _():
        m_ref[...] = jnp.full_like(m_ref, -jnp.inf)
        l_ref[...] = jnp.zeros_like(l_ref)
        acc_ref[...] = jnp.zeros_like(acc_ref)

    q = (q_ref[0, 0] * scale).astype(MATMUL_DTYPE)          # scale folded into Q
    k = k_ref[0, 0].astype(MATMUL_DTYPE)
    v = v_ref[0, 0].astype(MATMUL_DTYPE)

    s = jax.lax.dot_general(q, k, dimension_numbers=(((1,), (1,)), ((), ())),
                            preferred_element_type=jnp.float32)      # (S, tkv)
    m_prev = m_ref[...]
    m_new = jnp.maximum(m_prev, jnp.max(s, axis=-1, keepdims=True))
    alpha = jnp.exp(m_prev - m_new)
    p = jnp.exp(s - m_new)
    l_ref[...] = alpha * l_ref[...] + jnp.sum(p, axis=-1, keepdims=True)
    acc_ref[...] = alpha * acc_ref[...] + jnp.dot(
        p.astype(MATMUL_DTYPE), v, preferred_element_type=jnp.float32)
    m_ref[...] = m_new

    @pl.when(kv == pl.num_programs(2) - 1)
    def _():
        out = acc_ref[...] * pl.reciprocal(l_ref[...], approx=True)
        o_ref[...] = out.reshape(o_ref.shape).astype(o_ref.dtype)


# ----------------------------- Pallas wrappers ------------------------------

def pallas_linear(x, w, b=None, relu=False):
    """out = (x @ w + b), optional ReLU.  Handles non-aligned M/N/K by padding."""
    M, K = x.shape
    N = w.shape[1]
    cfg = _tpu_config()
    tm, Mp = _tile_and_pad(M, cfg["tm"], 8)
    tn, Np = _tile_and_pad(N, cfg["tn"], 128)
    tk, Kp = _tile_and_pad(K, cfg["tk"], 128)

    xp = _pad2d(x, Mp, Kp)
    wp = _pad2d(w, Kp, Np)
    grid = (Mp // tm, Np // tn, Kp // tk)

    in_specs = [
        pl.BlockSpec((tm, tk), lambda i, j, k: (i, k)),
        pl.BlockSpec((tk, tn), lambda i, j, k: (k, j)),
    ]
    args = [xp, wp]
    if b is not None:
        in_specs.append(pl.BlockSpec((1, tn), lambda i, j, k: (0, j)))
        args.append(_pad2d(b.reshape(1, N).astype(jnp.float32), 1, Np))

    out = pl.pallas_call(
        functools.partial(_linear_kernel, relu=relu, has_bias=b is not None),
        out_shape=jax.ShapeDtypeStruct((Mp, Np), jnp.float32),
        grid=grid,
        in_specs=in_specs,
        out_specs=pl.BlockSpec((tm, tn), lambda i, j, k: (i, j)),
        compiler_params=pltpu.CompilerParams(
            dimension_semantics=("parallel", "parallel", "arbitrary"),
            vmem_limit_bytes=cfg["vmem_limit"]),
        cost_estimate=pl.CostEstimate(
            flops=2 * Mp * Kp * Np, transcendentals=0,
            bytes_accessed=Mp * Kp * x.dtype.itemsize
            + Kp * Np * w.dtype.itemsize + Mp * Np * 4),
    )(*args)
    if (Mp, Np) != (M, N):
        out = out[:M, :N]
    return out


def pallas_linear_add_layernorm(x, w, b, residual, gamma, beta, eps=1e-5):
    """out = LayerNorm(residual + x @ w + b); N (= d_model) kept whole per tile."""
    M, K = x.shape
    N = w.shape[1]
    cfg = _tpu_config()
    tm, Mp = _tile_and_pad(M, cfg["tm"], 8)

    # VMEM audit (v7x): shrink tk while the resident working set is too big.
    tk = cfg["tk"]
    def _footprint(tk_):
        return (2 * tk_ * N * w.dtype.itemsize     # double-buffered weight blocks
                + 2 * tm * tk_ * x.dtype.itemsize  # double-buffered x blocks
                + 4 * tm * N * 4                   # residual + output blocks (f32)
                + 6 * N * 4)                       # bias / gamma / beta
    while tk > 128 and _footprint(tk) > cfg["vmem_limit"] // 2:
        tk //= 2
    tk, Kp = _tile_and_pad(K, tk, 128)

    xp = _pad2d(x, Mp, Kp)
    wp = _pad2d(w, Kp, N)
    rp = _pad2d(residual, Mp, N)
    grid = (Mp // tm, Kp // tk)

    out = pl.pallas_call(
        functools.partial(_linear_ln_kernel, eps=eps),
        out_shape=jax.ShapeDtypeStruct((Mp, N), jnp.float32),
        grid=grid,
        in_specs=[
            pl.BlockSpec((tm, tk), lambda i, k: (i, k)),
            pl.BlockSpec((tk, N), lambda i, k: (k, 0)),
            pl.BlockSpec((1, N), lambda i, k: (0, 0)),
            pl.BlockSpec((tm, N), lambda i, k: (i, 0)),
            pl.BlockSpec((1, N), lambda i, k: (0, 0)),
            pl.BlockSpec((1, N), lambda i, k: (0, 0)),
        ],
        out_specs=pl.BlockSpec((tm, N), lambda i, k: (i, 0)),
        compiler_params=pltpu.CompilerParams(
            dimension_semantics=("parallel", "arbitrary"),
            vmem_limit_bytes=cfg["vmem_limit"]),
        cost_estimate=pl.CostEstimate(
            flops=2 * Mp * Kp * N, transcendentals=0,
            bytes_accessed=Mp * Kp * x.dtype.itemsize
            + Kp * N * w.dtype.itemsize + 2 * Mp * N * 4),
    )(xp, wp, b.reshape(1, N).astype(jnp.float32), rp,
      gamma.reshape(1, N), beta.reshape(1, N))
    if Mp != M:
        out = out[:M]
    return out


def pallas_attention(q4, k4, v4, kv_block_target=512):
    """q4,k4,v4: (B, H, S, d_k) -> (B*S, H*d_k) softmax(QK^T/sqrt(d_k)) V."""
    B, H, S, d_k = q4.shape
    D = H * d_k
    scale = 1.0 / math.sqrt(d_k)
    cfg = _tpu_config()

    tkv = _pick_tile(S, kv_block_target, 8)   # divisor of S (full S if unaligned)
    num_kv = S // tkv
    lane_dense = (d_k % 128 == 0)

    if lane_dense:
        # Write each head straight into the final (B, S, D) layout (lane-dense).
        out_shape = jax.ShapeDtypeStruct((B, S, D), q4.dtype)
        out_spec = pl.BlockSpec((1, S, d_k), lambda b, h, kv: (b, 0, h))
    else:
        out_shape = jax.ShapeDtypeStruct((B, H, S, d_k), q4.dtype)
        out_spec = pl.BlockSpec((1, 1, S, d_k), lambda b, h, kv: (b, h, 0, 0))

    out = pl.pallas_call(
        functools.partial(_flash_attn_kernel, scale=scale),
        out_shape=out_shape,
        grid=(B, H, num_kv),
        in_specs=[
            pl.BlockSpec((1, 1, S, d_k), lambda b, h, kv: (b, h, 0, 0)),
            pl.BlockSpec((1, 1, tkv, d_k), lambda b, h, kv: (b, h, kv, 0)),
            pl.BlockSpec((1, 1, tkv, d_k), lambda b, h, kv: (b, h, kv, 0)),
        ],
        out_specs=out_spec,
        scratch_shapes=[
            pltpu.VMEM((S, 1), jnp.float32),     # running max
            pltpu.VMEM((S, 1), jnp.float32),     # running denom
            pltpu.VMEM((S, d_k), jnp.float32),   # output accumulator
        ],
        compiler_params=pltpu.CompilerParams(
            dimension_semantics=("parallel", "parallel", "arbitrary"),
            vmem_limit_bytes=cfg["vmem_limit"]),
        cost_estimate=pl.CostEstimate(
            flops=4 * B * H * S * S * d_k,
            transcendentals=B * H * S * S,
            bytes_accessed=4 * B * S * (3 * D + D)),
    )(q4, k4, v4)

    if lane_dense:
        return out.reshape(B * S, D)
    return out.transpose(0, 2, 1, 3).reshape(B * S, D)


# ----------------------------- Model ------------------------------

def init_params(key, vocab_size, d_model, n_heads, num_layers, ff_hidden, max_seq_length):
    keys = jax.random.split(key, 3 + num_layers)
    scale = 0.02
    wdt = jnp.bfloat16    # weights streamed from HBM as bf16 (perf review item 1)
    params = {
        "embed_tokens": scale * jax.random.normal(keys[0], (vocab_size, d_model), jnp.float32),
        "position_embeddings": scale * jax.random.normal(keys[1], (max_seq_length, d_model), jnp.float32),
        "lm_head_w": (scale * jax.random.normal(keys[2], (d_model, vocab_size), jnp.float32)).astype(wdt),
        "layers": [],
    }
    for li in range(num_layers):
        lk = jax.random.split(keys[3 + li], 4)
        layer = {
            # fused Q|K|V projection: (D, 3D) packed [Wq | Wk | Wv]
            "w_qkv": (scale * jax.random.normal(lk[0], (d_model, 3 * d_model), jnp.float32)).astype(wdt),
            "b_qkv": jnp.zeros((3 * d_model,), jnp.float32),
            "wo": (scale * jax.random.normal(lk[1], (d_model, d_model), jnp.float32)).astype(wdt),
            "bo": jnp.zeros((d_model,), jnp.float32),
            "w_ff1": (scale * jax.random.normal(lk[2], (d_model, ff_hidden), jnp.float32)).astype(wdt),
            "b_ff1": jnp.zeros((ff_hidden,), jnp.float32),
            "w_ff2": (scale * jax.random.normal(lk[3], (ff_hidden, d_model), jnp.float32)).astype(wdt),
            "b_ff2": jnp.zeros((d_model,), jnp.float32),
            "ln1_g": jnp.ones((d_model,), jnp.float32),
            "ln1_b": jnp.zeros((d_model,), jnp.float32),
            "ln2_g": jnp.ones((d_model,), jnp.float32),
            "ln2_b": jnp.zeros((d_model,), jnp.float32),
        }
        params["layers"].append(layer)
    return params


def transformer_forward(params, input_ids, n_heads):
    B, S = input_ids.shape
    D = params["embed_tokens"].shape[1]
    d_k = D // n_heads

    # Embedding gathers stay in plain JAX (glue).
    tok = jnp.take(params["embed_tokens"], input_ids, axis=0)        # (B, S, D)
    pos = params["position_embeddings"][:S]                          # (S, D)
    x2 = (tok + pos[None, :, :]).reshape(B * S, D).astype(jnp.float32)

    present_key_values = []
    for layer in params["layers"]:
        # --- fused Q/K/V projection (one matmul) ---
        qkv = pallas_linear(x2, layer["w_qkv"], layer["b_qkv"])      # (B*S, 3D)

        # Per-head (B, H, S, d_k) layout: this single reshape/transpose serves
        # BOTH as the returned present_key_values (PyTorch layout) AND as the
        # direct inputs to the attention kernel — no duplicated glue.
        qkv5 = qkv.reshape(B, S, 3, n_heads, d_k)
        q4 = qkv5[:, :, 0].transpose(0, 2, 1, 3)
        k4 = qkv5[:, :, 1].transpose(0, 2, 1, 3)
        v4 = qkv5[:, :, 2].transpose(0, 2, 1, 3)
        present_key_values.append((q4, k4, v4))

        # --- multi-head self-attention (no mask, matching the PyTorch module) ---
        attn = pallas_attention(q4, k4, v4)                          # (B*S, D)

        # --- out-projection + residual + LayerNorm1 (fused epilogue) ---
        h1 = pallas_linear_add_layernorm(attn, layer["wo"], layer["bo"],
                                         x2, layer["ln1_g"], layer["ln1_b"])

        # --- FeedForward: fc1+ReLU fused; fc2 + residual + LayerNorm2 fused ---
        # TODO(synk): dropout(p=0.1) treated as identity (eval-mode forward).
        ff = pallas_linear(h1, layer["w_ff1"], layer["b_ff1"], relu=True)
        x2 = pallas_linear_add_layernorm(ff, layer["w_ff2"], layer["b_ff2"],
                                         h1, layer["ln2_g"], layer["ln2_b"])

    # --- LM head (no bias) ---
    vocab = params["lm_head_w"].shape[1]
    logits = pallas_linear(x2, params["lm_head_w"], None).reshape(B, S, vocab)
    return logits, present_key_values


# ----------------------------- Pure-JAX reference (for verification) --------

def _ln(h, g, b, eps=1e-5):
    mean = jnp.mean(h, axis=-1, keepdims=True)
    var = jnp.mean(jnp.square(h - mean), axis=-1, keepdims=True)
    return (h - mean) * jax.lax.rsqrt(var + eps) * g + b


def reference_forward(params, input_ids, n_heads):
    B, S = input_ids.shape
    D = params["embed_tokens"].shape[1]
    d_k = D // n_heads
    f32 = lambda a: a.astype(jnp.float32)
    x = jnp.take(params["embed_tokens"], input_ids, axis=0) + params["position_embeddings"][:S][None]
    for layer in params["layers"]:
        qkv = x @ f32(layer["w_qkv"]) + layer["b_qkv"]
        q, k, v = jnp.split(qkv, 3, axis=-1)
        qh = q.reshape(B, S, n_heads, d_k).transpose(0, 2, 1, 3)
        kh = k.reshape(B, S, n_heads, d_k).transpose(0, 2, 1, 3)
        vh = v.reshape(B, S, n_heads, d_k).transpose(0, 2, 1, 3)
        s = jnp.einsum("bhqd,bhkd->bhqk", qh, kh) / math.sqrt(d_k)
        p = jax.nn.softmax(s, axis=-1)
        a = jnp.einsum("bhqk,bhkd->bhqd", p, vh).transpose(0, 2, 1, 3).reshape(B, S, D)
        a = a @ f32(layer["wo"]) + layer["bo"]
        h1 = _ln(x + a, layer["ln1_g"], layer["ln1_b"])
        ff = jnp.maximum(h1 @ f32(layer["w_ff1"]) + layer["b_ff1"], 0.0) @ f32(layer["w_ff2"]) + layer["b_ff2"]
        x = _ln(h1 + ff, layer["ln2_g"], layer["ln2_b"])
    return x @ f32(params["lm_head_w"])


# ----------------------------- Main ------------------------------

if __name__ == "__main__":
    # Small, self-consistent shapes (module defaults scaled down); d_k = 128 so
    # the lane-dense direct attention-output path is exercised.
    VOCAB = 512
    D_MODEL = 256
    N_HEADS = 2
    NUM_LAYERS = 2
    FF_HIDDEN = 512
    MAX_SEQ = 16
    BATCH = 2
    SEQ = 8

    key = jax.random.PRNGKey(0)
    pkey, ikey, akey = jax.random.split(key, 3)
    params = init_params(pkey, VOCAB, D_MODEL, N_HEADS, NUM_LAYERS, FF_HIDDEN, MAX_SEQ)
    input_ids = jax.random.randint(ikey, (BATCH, SEQ), 0, VOCAB, dtype=jnp.int32)

    logits, presents = transformer_forward(params, input_ids, N_HEADS)
    logits = jax.block_until_ready(logits)

    assert logits.shape == (BATCH, SEQ, VOCAB)
    assert len(presents) == NUM_LAYERS
    assert presents[0][0].shape == (BATCH, N_HEADS, SEQ, D_MODEL // N_HEADS)
    assert bool(jnp.all(jnp.isfinite(logits)))

    # Numerical check vs pure-JAX reference (bf16 MXU + approx reciprocal -> loose tol).
    ref = reference_forward(params, input_ids, N_HEADS)
    assert bool(jnp.allclose(logits, ref, rtol=5e-2, atol=5e-2)), \
        float(jnp.max(jnp.abs(logits - ref)))

    # Also exercise the d_k < 128 fallback layout and multi-block online softmax.
    k1, k2, k3 = jax.random.split(akey, 3)
    qa = jax.random.normal(k1, (2, 4, 16, 64), jnp.float32)
    ka = jax.random.normal(k2, (2, 4, 16, 64), jnp.float32)
    va = jax.random.normal(k3, (2, 4, 16, 64), jnp.float32)
    a_pl = pallas_attention(qa, ka, va, kv_block_target=8)
    s_ref = jnp.einsum("bhqd,bhkd->bhqk", qa, ka) / math.sqrt(64)
    a_ref = jnp.einsum("bhqk,bhkd->bhqd", jax.nn.softmax(s_ref, -1), va)
    a_ref = a_ref.transpose(0, 2, 1, 3).reshape(2 * 16, 4 * 64)
    assert bool(jnp.allclose(a_pl, a_ref, rtol=5e-2, atol=5e-2))

    print("KERNEL_OK")
</pallas_src>

<mosaic_0001>
module attributes {stable_mosaic.version = 11 : i64} {
  func.func @_linear_kernel(%arg0: i32, %arg1: i32, %arg2: i32, %arg3: memref<16x256xf32, #tpu.memory_space<vmem>>, %arg4: memref<256x256xbf16, #tpu.memory_space<vmem>>, %arg5: memref<1x256xf32, #tpu.memory_space<vmem>>, %arg6: memref<16x256xf32, #tpu.memory_space<vmem>>) attributes {dimension_semantics = [#tpu.dimension_semantics<parallel>, #tpu.dimension_semantics<parallel>, #tpu.dimension_semantics<arbitrary>], iteration_bounds = array<i64: 1, 3, 1>, scalar_prefetch = 0 : i64, scratch_operands = 0 : i64, tpu.core_type = #tpu.core_type<tc>, window_params = [{transform_indices = @transform_0, window_bounds = array<i64: 16, 256>}, {transform_indices = @transform_1, window_bounds = array<i64: 256, 256>}, {transform_indices = @transform_2, window_bounds = array<i64: 1, 256>}, {transform_indices = @transform_3, window_bounds = array<i64: 16, 256>}]} {
    %c0_i32 = arith.constant 0 : i32
    %0 = arith.cmpi eq, %arg2, %c0_i32 : i32
    %1 = arith.extui %0 : i1 to i32
    %c0_i32_0 = arith.constant 0 : i32
    %2 = arith.cmpi ne, %1, %c0_i32_0 : i32
    scf.if %2 {
      %cst_10 = arith.constant 0.000000e+00 : f32
      %13 = vector.broadcast %cst_10 : f32 to vector<16x256xf32>
      %c0_11 = arith.constant 0 : index
      %c0_12 = arith.constant 0 : index
      %14 = vector.load %arg6[%c0_11, %c0_12] : memref<16x256xf32, #tpu.memory_space<vmem>>, vector<16x256xf32>
      tpu.vector_store %arg6[%c0_11, %c0_12], %13 {strides = array<i32>} : memref<16x256xf32, #tpu.memory_space<vmem>>, vector<16x256xf32>,
    } else {
    }
    %c0 = arith.constant 0 : index
    %c0_1 = arith.constant 0 : index
    %3 = vector.load %arg6[%c0, %c0_1] : memref<16x256xf32, #tpu.memory_space<vmem>>, vector<16x256xf32>
    %c0_2 = arith.constant 0 : index
    %c0_3 = arith.constant 0 : index
    %4 = vector.load %arg3[%c0_2, %c0_3] : memref<16x256xf32, #tpu.memory_space<vmem>>, vector<16x256xf32>
    %5 = arith.truncf %4 : vector<16x256xf32> to vector<16x256xbf16>
    %c0_4 = arith.constant 0 : index
    %c0_5 = arith.constant 0 : index
    %6 = vector.load %arg4[%c0_4, %c0_5] : memref<256x256xbf16, #tpu.memory_space<vmem>>, vector<256x256xbf16>
    %cst = arith.constant dense<0.000000e+00> : vector<16x256xf32>
    %7 = tpu.matmul %5, %6, %cst {dimension_numbers = #tpu.dot_dimension_numbers<[1], [0], [0], [1], [0, 0, 1, 1], [], []>} : vector<16x256xbf16>, vector<256x256xbf16>, vector<16x256xf32> -> vector<16x256xf32>
    %8 = arith.addf %3, %7 : vector<16x256xf32>
    %c0_6 = arith.constant 0 : index
    %c0_7 = arith.constant 0 : index
    %9 = vector.load %arg6[%c0_6, %c0_7] : memref<16x256xf32, #tpu.memory_space<vmem>>, vector<16x256xf32>
    tpu.vector_store %arg6[%c0_6, %c0_7], %8 {strides = array<i32>} : memref<16x256xf32, #tpu.memory_space<vmem>>, vector<16x256xf32>,
    %c0_i32_8 = arith.constant 0 : i32
    %10 = arith.cmpi eq, %arg2, %c0_i32_8 : i32
    %11 = arith.extui %10 : i1 to i32
    %c0_i32_9 = arith.constant 0 : i32
    %12 = arith.cmpi ne, %11, %c0_i32_9 : i32
    scf.if %12 {
      %c0_10 = arith.constant 0 : index
      %c0_11 = arith.constant 0 : index
      %13 = vector.load %arg6[%c0_10, %c0_11] : memref<16x256xf32, #tpu.memory_space<vmem>>, vector<16x256xf32>
      %c0_12 = arith.constant 0 : index
      %c0_13 = arith.constant 0 : index
      %14 = vector.load %arg5[%c0_12, %c0_13] : memref<1x256xf32, #tpu.memory_space<vmem>>, vector<1x256xf32>
      %15 = vector.broadcast %14 : vector<1x256xf32> to vector<16x256xf32>
      %16 = arith.addf %13, %15 : vector<16x256xf32>
      %c0_14 = arith.constant 0 : index
      %c0_15 = arith.constant 0 : index
      %17 = vector.load %arg6[%c0_14, %c0_15] : memref<16x256xf32, #tpu.memory_space<vmem>>, vector<16x256xf32>
      tpu.vector_store %arg6[%c0_14, %c0_15], %16 {strides = array<i32>} : memref<16x256xf32, #tpu.memory_space<vmem>>, vector<16x256xf32>,
    } else {
    }
    return
  }
  func.func @transform_0(%arg0: i32, %arg1: i32, %arg2: i32) -> (i32, i32) {
    %c0_i32 = arith.constant 0 : i32
    return %arg0, %arg2 : i32, i32
  }
  func.func @transform_1(%arg0: i32, %arg1: i32, %arg2: i32) -> (i32, i32) {
    %c0_i32 = arith.constant 0 : i32
    return %arg2, %arg1 : i32, i32
  }
  func.func @transform_2(%arg0: i32, %arg1: i32, %arg2: i32) -> (i32, i32) {
    %c0_i32 = arith.constant 0 : i32
    %c0_i32_0 = arith.constant 0 : i32
    return %c0_i32, %arg1 : i32, i32
  }
  func.func @transform_3(%arg0: i32, %arg1: i32, %arg2: i32) -> (i32, i32) {
    %c0_i32 = arith.constant 0 : i32
    return %arg0, %arg1 : i32, i32
  }
}

</mosaic_0001>

<bundles_post_ra>
// kernel: tpu_custom_call.1
= control target key start
LH: loop header
LB: loop body
LE: loop exit
PB: predicated region body
PF: predicated region fallthrough
CT: control target
= control target key end

     0   :  { %8 = vsyncpa [#allocation3], 0  ;;  %s1298_s0 = inlined_call_operand.hbm [shape: f32[16,256], index: 0, kind: input, shape index: {}]   ;;  %s1299_s1 = inlined_call_operand.hbm [shape: bf16[256,768], index: 1, kind: input, shape index: {}]   ;;  %s1300_s2 = inlined_call_operand.vmem [shape: f32[1,768], index: 2, kind: input, shape index: {}]   ;;  %s1301_s3 = inlined_call_operand.hbm [shape: f32[16,768], index: 3, kind: output, shape index: {}]  }
   0x1   :  { %9 = vsyncpa [#allocation6], 0 }
   0x2   :  { %11 = vsyncpa [#allocation6 + $0x1], 0 }
   0x3   :  { %12 = vsyncpa [#allocation4], 0 }
   0x4   :  { %14 = vsyncpa [#allocation4 + $0x1], 0  ;;  %s1048_s12 = smov 0   ;;  %s1050_s13 = smov 0  }
   0x5   :  { %s1052_s14 = smov 0   ;;  %s1054_s15 = smov 0  }
   0x6   :  { %s1056_s16 = smov 0   ;;  %s1058_s17 = smov 0  }
   0x7 LB: > { %s689_s18 = sadd.s32 4294967295, %s1015_s17   ;;  %s690_s19 = sadd.s32 4294967294, %s1015_s17   ;;  %s1015_s17 = sphi %s1058_s17, %s20_s17   ;;  %s1011_s16 = sphi %s1056_s16, %s1326_s16   ;;  %s1007_s15 = sphi %s1054_s15, %s1325_s15   ;;  %s1003_s14 = sphi %s1052_s14, %s1324_s14   ;;  %s999_s13 = sphi %s1050_s13, %s1323_s13   ;;  %s995_s12 = sphi %s1048_s12, %s1322_s12  }
   0x8   : > { %p83_p0 = scmp.ne.s32.totalorder %s1003_s14, %s999_s13  ;;  %p84_p1 = scmp.eq.s32.totalorder %s1015_s17, 0 }
   0x9   : > { %p89_p2 = scmp.ne.s32.totalorder %s999_s13, %s995_s12  ;;  %p1085_p3 = scmp.eq.s32.totalorder %s689_s18, 0 }
   0xa   : > { %p1089_p4 = por %p84_p1, %p83_p0  ;;  %p141_p5 = scmp.eq.s32.totalorder %s689_s18, 2 }
   0xb   : > { %s1308_s20 = scalar_select %p1085_p3, 1, 0 }
   0xc   : > { %p1095_p6 = por %p1085_p3, %p89_p2  ;;  %p147_p7 = scmp.eq.s32.totalorder %s690_s19, 2 }
   0xd   : > { %p1099_p8 = por %p141_p5, %p83_p0  ;;  %p691_p9 = scmp.ge.s32.totalorder %s1015_s17, 1 }
   0xe   : > { %s1310_s22 = scalar_select %p1095_p6, 1, 0 }
   0xf   : > { %s1311_s23 = scalar_select %p1099_p8, 1, 0 }
  0x10   : > { %p1104_p10 = por %p147_p7, %p89_p2  ;;  %p154_p11 = scmp.lt.s32.totalorder %s1015_s17, 4 }
  0x11   : > { %s1017_s26 = smov [#allocation2]   ;;  %p762_p0 = scmp.lt.s32.totalorder %s1015_s17, 3 }
  0x12   : > { %s1312_s24 = scalar_select %p1104_p10, 1, 0 }
  0x13   : > { %p1109_p12 = pnand %p691_p9, %p154_p11  ;;  %s172_s27 = sshll.u32 %s1017_s26, 4  ;;  %s173_s27 = int_to_ptr.vmem [resolvable:$true] %s172_s27 }
  0x14   : > { %p1124_p2 = pnand %p762_p0, %p1089_p4  ;;  %s35_s30 = sadd.s32 1, %s1011_s16 }
  0x15   : > { %s1313_s25 = scalar_select %p1109_p12, 1, 0 }
  0x16   : > { %p749_p13 = pneg %p1109_p12  ;;  %s871_s6 = scalar_lea.hbm %s1298_s0, 512 }
  0x17   : > { %s1315_s29 = scalar_select %p1124_p2, 1, 0 }
  0x18   : > { %p1118_p1 = pnand %p749_p13, %p1085_p3  ;;  %p872_p5 = scmp.ne.s32.totalorder %s1298_s0, %s871_s6 }
  0x19   : > { %p878_p4 = scmp.lt.u32.totalorder %s871_s6, %s1298_s0 }
  0x1a   : > { %p873_p7 = pneg %p1118_p1 }
  0x1c   : > { %p874_p9 = pnand %p873_p7, %p872_p5 }
  0x1e   : > { %p875_p11 = pneg %p874_p9 }
  0x20   : > { %p880_p13 = pnand %p878_p4, %p875_p11 }
  0x22   : > { %883 = shalt.err (!%p880_p13)
}
  0x23   : > { %s884_s11 = scalar_lea.vmem %s173_s27, 512  ;;  %p892_p6 = scmp.lt.s32.totalorder %s173_s27, %s173_s27 }
  0x24   : > { %p885_p0 = scmp.ne.s32.totalorder %s173_s27, %s884_s11  ;;  %p893_p3 = scmp.lt.s32.totalorder %s884_s11, %s884_s11 }
  0x26   : > { %p887_p10 = pnand %p885_p0, %p873_p7  ;;  %p894_p12 = por %p893_p3, %p892_p6 }
  0x28   : > { %p888_p8 = pneg %p887_p10 }
  0x2a   : > { %p895_p2 = pnand %p894_p12, %p888_p8 }
  0x2c   : > { %898 = shalt.err (!%p895_p2)
}
  0x2d   : > { %s1018_s18 = smov 256   ;;  %s1019_s19 = smov 16  }
  0x2e   : > { %752 = dma.hbm_to_vmem [thread:$0]  (!%p1118_p1), %s1298_s0, 512, %s173_s27, [#allocation3], %s1018_s18, %s1018_s18, %s1019_s19  }
  0x2f   : > { %p37_p5 = scmp.ge.s32.totalorder %s35_s30, 3  ;;  %s76_s4 = sadd.s32 1, %s1003_s14 }
  0x30   : > { %s186_s5 = sand.u32 1, %s1003_s14   ;;  %s739_s8 = sshll.u32 %s1011_s16, 7 }
  0x31   : > { %s1328_s30 = smov (%p37_p5, %s35_s30), 0  ;;  %s694_s6 = sshll.u32 %s186_s5, 8 }
  0x32   : > { %s72_s7 = ssub.s32 %s1011_s16, %s1328_s30  ;;  %s1155_s28 = scalar_lea.hbm %s1299_s1, %s739_s8 }
  0x33   : > { %p74_p3 = scmp.eq.s32.totalorder %s72_s7, 0  ;;  %s190_s27 = scalar_lea.vmem [#allocation5], %s694_s6 }
  0x34   : > { %s200_s11 = sshll.u32 %s190_s27, 4  ;;  %s1162_s19 = scalar_lea.sflag [#allocation6], %s186_s5  ;;  %s1160_s11 = int_to_ptr.vmem [resolvable:$true] %s200_s11 }
  0x35   : > { %s1158_s18 = scalar_select %p74_p3, %s1003_s14, %s76_s4  }
  0x36   : > { %s899_s21 = scalar_lea.hbm %s1155_s28, 4096  ;;  %p1316_p8 = scmp.ne.s32.totalorder %s1315_s29, 0 }
  0x37   : > { %p900_p6 = scmp.ne.s32.totalorder %s1155_s28, %s899_s21  ;;  %s904_s8 = scalar_lea.hbm %s1299_s1, 12288 }
  0x38   : > { %p901_p10 = pneg %p1316_p8  ;;  %p905_p2 = scmp.lt.u32.totalorder %s1155_s28, %s1299_s1 }
  0x39   : > { %p906_p7 = scmp.lt.u32.totalorder %s904_s8, %s899_s21  ;;  %p908_p11 = scmp.lt.u32.totalorder %s899_s21, %s1155_s28 }
  0x3a   : > { %p902_p12 = pnand %p901_p10, %p900_p6 }
  0x3b   : > { %p907_p9 = por %p906_p7, %p905_p2 }
  0x3c   : > { %p903_p1 = pneg %p902_p12 }
  0x3d   : > { %p909_p4 = por %p908_p11, %p907_p9 }
  0x3f   : > { %p910_p13 = pnand %p909_p4, %p903_p1 }
  0x41   : > { %913 = shalt.err (!%p910_p13)
}
  0x42   : > { %s914_s4 = scalar_lea.vmem %s1160_s11, 4096  ;;  %s1020_s5 = smov [#allocation5]  }
  0x43   : > { %p915_p0 = scmp.ne.s32.totalorder %s1160_s11, %s914_s4  ;;  %s919_s10 = sshll.u32 %s1020_s5, 4  ;;  %s920_s10 = int_to_ptr.vmem [resolvable:$false] %s919_s10 }
  0x44   : > { %s921_s27 = scalar_lea.vmem %s920_s10, 8192  ;;  %p922_p6 = scmp.lt.s32.totalorder %s1160_s11, %s920_s10 }
  0x45   : > { %p917_p5 = pnand %p915_p0, %p901_p10  ;;  %p923_p12 = scmp.lt.s32.totalorder %s921_s27, %s914_s4 }
  0x47   : > { %p918_p3 = pneg %p917_p5  ;;  %p924_p2 = por %p923_p12, %p922_p6 }
  0x49   : > { %p925_p7 = pnand %p924_p2, %p918_p3 }
  0x4b   : > { %928 = shalt.err (!%p925_p7)
}
  0x4c   : > { %s1021_s21 = smov 384   ;;  %s1022_s26 = smov 128  }
  0x4d   : > { %s1023_s7 = smov 8   ;;  %p1317_p10 = scmp.ne.s32.totalorder %s1313_s25, 0 }
  0x4e   : > { %756 = dma.hbm_to_vmem [thread:$0]  (!%p1316_p8), %s1155_s28, 4096, %s1160_s11, %s1162_s19, %s1021_s21, %s1022_s26, %s1023_s7  }
  0x4f   : > { %220 = sbr.rel (%p1317_p10) target bundleno = 389 (0x185), region = 32  ;;  %p1318_p1 = scmp.ne.s32.totalorder (!%p1317_p10), %s1308_s20, 0 }
  0x56   : > { %982 = dma.done.wait (%p1318_p1), [#allocation3], 512  }
  0x57   : > { %984 = vsyncadd (%p1318_p1), [#allocation3], 4294966784  ;;  %s1197_s8 = sand.u32 1, %s999_s13   ;;  %p1319_p8 = scmp.ne.s32.totalorder %s1310_s22, 0 }
  0x58   : > { %s699_s6 = sshll.u32 %s1197_s8, 8  ;;  %s227_s9 = scalar_lea.sflag [#allocation6], %s1197_s8 }
  0x59   : > { %s1201_s4 = scalar_lea.vmem [#allocation5], %s699_s6 }
  0x5a   : > { %986 = dma.done.wait (%p1319_p8), %s227_s9, 4096  }
  0x5b   : > { %988 = vsyncadd (%p1319_p8), %s227_s9, 4294963200  ;;  %v823_v0 = vld [vmem:[%s1201_s4 + $0x4] ss:$8 sps:$4 sm:$0xff]   ;;  %v825_v1 = vld [vmem:[%s1201_s4] ss:$8 sps:$4 sm:$0xff]   ;;  %s701_s20 = sshll.u32 %s1007_s15, 1  ;;  %v538_v38 = vlaneseq }
  0x5c   : > { %478 = vmatprep.subr.bf16.mxu0 %v823_v0  ;;  %v826_v2 = vld [vmem:[%s1201_s4 + $0x14] ss:$8 sps:$4 sm:$0xff]   ;;  %v828_v3 = vld [vmem:[%s1201_s4 + $0x10] ss:$8 sps:$4 sm:$0xff]   ;;  %v829_v4 = vld [vmem:[%s1201_s4 + $0x24] ss:$8 sps:$4 sm:$0xff]  }
  0x5d   : > { %479 = vmatpush1.bf16.msra.mxu0 %v825_v1  ;;  %v831_v5 = vld [vmem:[%s1201_s4 + $0x20] ss:$8 sps:$4 sm:$0xff]   ;;  %v832_v6 = vld [vmem:[%s1201_s4 + $0x34] ss:$8 sps:$4 sm:$0xff]   ;;  %v834_v7 = vld [vmem:[%s1201_s4 + $0x30] ss:$8 sps:$4 sm:$0xff]  }
  0x5e   : > { %480 = vmatprep.subr.bf16.mxu0 %v826_v2  ;;  %v835_v8 = vld [vmem:[%s1201_s4 + $0x44] ss:$8 sps:$4 sm:$0xff]   ;;  %v837_v9 = vld [vmem:[%s1201_s4 + $0x40] ss:$8 sps:$4 sm:$0xff]   ;;  %v838_v10 = vld [vmem:[%s1201_s4 + $0x54] ss:$8 sps:$4 sm:$0xff]  }
  0x5f   : > { %v840_v11 = vld [vmem:[%s1201_s4 + $0x50] ss:$8 sps:$4 sm:$0xff]   ;;  %v841_v12 = vld [vmem:[%s1201_s4 + $0x64] ss:$8 sps:$4 sm:$0xff]   ;;  %v843_v16 = vld [vmem:[%s1201_s4 + $0x60] ss:$8 sps:$4 sm:$0xff]  }
  0x60   : > { %v281_v13 = vld [vmem:[#allocation2 + $0x8] sm:$0xff]  ;;  %v283_v14 = vld [vmem:[#allocation2 + $0x18] sm:$0xff]  ;;  %v280_v35 = vld [vmem:[#allocation2] sm:$0xff]  ;;  %p262_p9 = scmp.lt.s32.totalorder %s701_s20, 5  ;;  %v539_v39 = vshrl.u32 %v538_v38, 7  ;;  %s700_s28 = sshll.u32 %s1197_s8, 5 }
  0x61   : > { %481 = vmatpush1.bf16.msra.mxu0 %v828_v3  ;;  %v285_v15 = vpack.c.bf16 %v283_v14, %v281_v13  ;;  %v844_v17 = vld [vmem:[%s1201_s4 + $0x74] ss:$8 sps:$4 sm:$0xff]   ;;  %v846_v18 = vld [vmem:[%s1201_s4 + $0x70] ss:$8 sps:$4 sm:$0xff]   ;;  %v847_v19 = vld [vmem:[%s1201_s4 + $0x84] ss:$8 sps:$4 sm:$0xff]  }
  0x62   : > { %482 = vmatprep.subr.bf16.mxu0 %v829_v4  ;;  %v849_v20 = vld [vmem:[%s1201_s4 + $0x80] ss:$8 sps:$4 sm:$0xff]   ;;  %v850_v21 = vld [vmem:[%s1201_s4 + $0x94] ss:$8 sps:$4 sm:$0xff]   ;;  %v852_v22 = vld [vmem:[%s1201_s4 + $0x90] ss:$8 sps:$4 sm:$0xff]  }
  0x63   : > { %510 = vmatprep.mubr.bf16.mxu0 %v285_v15  ;;  %v853_v23 = vld [vmem:[%s1201_s4 + $0xa4] ss:$8 sps:$4 sm:$0xff]   ;;  %v855_v24 = vld [vmem:[%s1201_s4 + $0xa0] ss:$8 sps:$4 sm:$0xff]   ;;  %v856_v25 = vld [vmem:[%s1201_s4 + $0xb4] ss:$8 sps:$4 sm:$0xff]  }
  0x64   : > { %v858_v26 = vld [vmem:[%s1201_s4 + $0xb0] ss:$8 sps:$4 sm:$0xff]   ;;  %v859_v27 = vld [vmem:[%s1201_s4 + $0xc4] ss:$8 sps:$4 sm:$0xff]   ;;  %v861_v28 = vld [vmem:[%s1201_s4 + $0xc0] ss:$8 sps:$4 sm:$0xff]  }
  0x65   : > { %483 = vmatpush1.bf16.msra.mxu0 %v831_v5  ;;  %v862_v29 = vld [vmem:[%s1201_s4 + $0xd4] ss:$8 sps:$4 sm:$0xff]   ;;  %v864_v30 = vld [vmem:[%s1201_s4 + $0xd0] ss:$8 sps:$4 sm:$0xff]   ;;  %v865_v31 = vld [vmem:[%s1201_s4 + $0xe4] ss:$8 sps:$4 sm:$0xff]  }
  0x66   : > { %484 = vmatprep.subr.bf16.mxu0 %v832_v6  ;;  %v867_v32 = vld [vmem:[%s1201_s4 + $0xe0] ss:$8 sps:$4 sm:$0xff]   ;;  %v868_v33 = vld [vmem:[%s1201_s4 + $0xf4] ss:$8 sps:$4 sm:$0xff]   ;;  %v870_v34 = vld [vmem:[%s1201_s4 + $0xf0] ss:$8 sps:$4 sm:$0xff]  }
  0x67   : > { %v282_v36 = vld [vmem:[#allocation2 + $0x10] sm:$0xff]  ;;  %s1330_s20 = smov (!%p262_p9, %s701_s20), 5  ;;  %v540_v40 = vsub.s32 0, %v539_v39  ;;  %v544_v42 = vsub.s32 1, %v539_v39  ;;  %s740_s11 = sshll.u32 %s1007_s15, 8 }
  0x68   : > { %v284_v37 = vpack.c.bf16 %v282_v36, %v280_v35  ;;  %s264_s29 = scalar_lea.vmem %s1300_s2, %s1330_s20  ;;  %s256_s19 = scalar_lea.vmem [#allocation7], %s700_s28 }
  0x69   : > { %485 = vmatpush1.bf16.msra.mxu0 %v834_v7  ;;  %v536_v41 = vld [vmem:[%s264_s29] sm:$0x3]  ;;  %s573_s5 = sshll.u32 %s256_s19, 4  ;;  %s1248_s21 = scalar_lea.hbm %s1301_s3, %s740_s11  ;;  %s1250_s5 = int_to_ptr.vmem [resolvable:$true] %s573_s5 }
  0x6a   : > { %486 = vmatprep.subr.bf16.mxu0 %v835_v8  ;;  %v541_v43 = vrot.slane %v536_v41, %v540_v40  ;;  %v545_v45 = vrot.slane %v536_v41, %v544_v42  ;;  %s557_s15 = scalar_lea.sflag [#allocation4], %s1197_s8  ;;  %s929_s26 = scalar_lea.vmem %s1250_s5, 512 }
  0x6b   : > { %p930_p11 = scmp.ne.s32.totalorder %s1250_s5, %s929_s26  ;;  %p1320_p4 = scmp.ne.s32.totalorder %s1311_s23, 0 }
  0x6c   : > { %s1024_s7 = smov [#allocation7]  }
  0x6d   : > { %487 = vmatpush1.bf16.msra.mxu0 %v837_v9  ;;  %p931_p13 = pnand %p930_p11, %p1320_p4  ;;  %s933_s6 = sshll.u32 %s1024_s7, 4  ;;  %s934_s6 = int_to_ptr.vmem [resolvable:$false] %s933_s6 }
  0x6e   : > { %488 = vmatprep.subr.bf16.mxu0 %v838_v10  ;;  %s935_s9 = scalar_lea.vmem %s934_s6, 1024  ;;  %p936_p5 = scmp.lt.s32.totalorder %s1250_s5, %s934_s6 }
  0x6f   : > { %p932_p0 = pneg %p931_p13  ;;  %p937_p3 = scmp.lt.s32.totalorder %s935_s9, %s929_s26 }
  0x71   : > { %489 = vmatpush1.bf16.msra.mxu0 %v840_v11  ;;  %p938_p6 = por %p937_p3, %p936_p5 }
  0x72   : > { %490 = vmatprep.subr.bf16.mxu0 %v841_v12 }
  0x73   : > { %p939_p12 = pnand %p938_p6, %p932_p0 }
  0x75   : > { %491 = vmatpush1.bf16.msra.mxu0 %v843_v16 }
  0x76   : > { %492 = vmatprep.subr.bf16.mxu0 %v844_v17 }
  0x79   : > { %493 = vmatpush1.bf16.msra.mxu0 %v846_v18 }
  0x7a   : > { %494 = vmatprep.subr.bf16.mxu0 %v847_v19 }
  0x7d   : > { %495 = vmatpush1.bf16.msra.mxu0 %v849_v20 }
  0x7e   : > { %496 = vmatprep.subr.bf16.mxu0 %v850_v21 }
  0x81   : > { %497 = vmatpush1.bf16.msra.mxu0 %v852_v22 }
  0x82   : > { %498 = vmatprep.subr.bf16.mxu0 %v853_v23 }
  0x85   : > { %499 = vmatpush1.bf16.msra.mxu0 %v855_v24 }
  0x86   : > { %500 = vmatprep.subr.bf16.mxu0 %v856_v25 }
  0x89   : > { %501 = vmatpush1.bf16.msra.mxu0 %v858_v26 }
  0x8a   : > { %502 = vmatprep.subr.bf16.mxu0 %v859_v27 }
  0x8d   : > { %503 = vmatpush1.bf16.msra.mxu0 %v861_v28 }
  0x8e   : > { %504 = vmatprep.subr.bf16.mxu0 %v862_v29 }
  0x91   : > { %505 = vmatpush1.bf16.msra.mxu0 %v864_v30 }
  0x92   : > { %506 = vmatprep.subr.bf16.mxu0 %v865_v31 }
  0x95   : > { %507 = vmatpush1.bf16.msra.mxu0 %v867_v32 }
  0x96   : > { %508 = vmatprep.subr.bf16.mxu0 %v868_v33 }
  0x99   : > { %509 = vmatpush1.bf16.msra.mxu0 %v870_v34 }
  0x9c   : > { %511 = vmatmul.mubr.bf16.vlgmr.msra.gmra.mrb[0].mxu0 %v284_v37 }
 0x16f   : > { %v512_v44 = vpop.f32.mrb[0].mxu0 }
 0x170   : > { %v514_v46 = vpop.f32.mrb[1].mxu0  ;;  %v548_v48 = vadd.f32 %v541_v43, %v512_v44 }
 0x171   : > { %v516_v47 = vpop.f32.mrb[2].mxu0  ;;  %v549_v50 = vadd.f32 %v545_v45, %v514_v46 }
 0x172   : > { %v518_v49 = vpop.f32.mrb[3].mxu0  ;;  %552 = vst [vmem:[%s256_s19] sm:$0xff] %v548_v48  ;;  %v550_v51 = vadd.f32 %v541_v43, %v516_v47 }
 0x173   : > { %553 = vst [vmem:[%s256_s19 + $0x8] sm:$0xff] %v549_v50  ;;  %v551_v52 = vadd.f32 %v545_v45, %v518_v49 }
 0x174   : > { %554 = vst [vmem:[%s256_s19 + $0x10] sm:$0xff] %v550_v51 }
 0x175   : > { %555 = vst [vmem:[%s256_s19 + $0x18] sm:$0xff] %v551_v52 }
 0x176   : > { %942 = shalt.err (!%p939_p12)
}
 0x177   : > { %s943_s4 = scalar_lea.hbm %s1248_s21, 512  ;;  %s947_s25 = scalar_lea.hbm %s1301_s3, 1536 }
 0x178   : > { %p944_p2 = scmp.ne.s32.totalorder %s1248_s21, %s943_s4  ;;  %p948_p1 = scmp.lt.u32.totalorder %s1248_s21, %s1301_s3 }
 0x179   : > { %p949_p8 = scmp.lt.u32.totalorder %s947_s25, %s943_s4  ;;  %p951_p11 = scmp.lt.u32.totalorder %s943_s4, %s1248_s21 }
 0x17a   : > { %p945_p7 = pnand %p944_p2, %p1320_p4 }
 0x17b   : > { %p950_p9 = por %p949_p8, %p948_p1 }
 0x17c   : > { %p946_p10 = pneg %p945_p7 }
 0x17d   : > { %p952_p13 = por %p951_p11, %p950_p9 }
 0x17f   : > { %p953_p0 = pnand %p952_p13, %p946_p10 }
 0x181   : > { %956 = shalt.err (!%p953_p0)
}
 0x182   : > { %s1025_s11 = smov 256   ;;  %s1026_s19 = smov 768  }
 0x183   : > { %s1027_s10 = smov 16  }
 0x184   : > { %747 = dma.vmem_to_hbm [thread:$0]  (%p1320_p4), %s1250_s5, 512, %s1248_s21, %s557_s15, %s1025_s11, %s1026_s19, %s1027_s10  }
 0x185 PF: > { %p764_p5 = scmp.ge.s32.totalorder %s1015_s17, 2  ;;  %s588_s27 = sand.u32 1, %s995_s12  }
 0x186   : > { %p1321_p3 = scmp.ne.s32.totalorder %s1312_s24, 0  ;;  %s589_s26 = scalar_lea.sflag [#allocation4], %s588_s27 }
 0x188   : > { %p758_p6 = pnand %p764_p5, %p1321_p3 }
 0x18a   : > { %990 = dma.done.wait (!%p758_p6), %s589_s26, 512  }
 0x18b   : > { %992 = vsyncadd (!%p758_p6), %s589_s26, 4294966784  ;;  %s20_s17 = sadd.s32 1, %s1015_s17   ;;  %s1322_s12 = smov %s999_s13 }
 0x18c   : > { %p17_p12 = scmp.ge.s32.totalorder %s20_s17, 5   ;;  %s1323_s13 = smov %s1003_s14 }
 0x18d   : > { %s1324_s14 = smov %s1158_s18  ;;  %s1325_s15 = smov %s1011_s16 }
 0x18e   : > { %s1326_s16 = smov %s1328_s30  ;;  %19 = sbr.rel (!%p17_p12) target bundleno = 7 (0x7), region = 94 }
 0x195   :  { %594 = vsyncpa [#allocation3], 1 }
 0x196   :  { %596 = vsyncpa [#allocation3 + $0x1], 1 }
 0x197   :  { %597 = vsyncpa [#allocation6], 1 }
 0x198   :  { %599 = vsyncpa [#allocation6 + $0x1], 1 }
 0x199   :  { %600 = vsyncpa [#allocation4], 1 }
 0x19a   :  { %602 = vsyncpa [#allocation4 + $0x1], 1 }

</bundles_post_ra>
